<compile_context>
chip_gen: v6e
topology: v6e:2x2x1
jax: 0.10.0
libtpu: 0.0.40
codegen_flags: <defaults>
</compile_context>

<pallas_src>
import functools

import jax
import jax.numpy as jnp
import numpy as np
from jax.experimental import pallas as pl
from jax.experimental.pallas import tpu as pltpu

BN_EPS = 1e-5

# Matmul operand dtype inside the kernel.  bf16 is the MXU-peak dtype on
# v6e/v7x and halves band-weight VMEM, but costs ~1e-3 error; kept at f32 so
# the strict 1e-4 comparison against the f32 reference passes.
MATMUL_DTYPE = jnp.float32


def _band_weights_k(w_hwio, width):
    """(3, 3, Ci, Co) HWIO conv weight -> (3*W*Ci, W*Co) block-banded matrix.

    Row block dy (size W*Ci) applies to the input row shifted by dy - 1:
        y[h] = x[h-1] @ B0 + x[h] @ B1 + x[h+1] @ B2      (zero rows when OOB)
    Within each block, B_dy[xi*Ci+ci, xo*Co+co] = w[dy, dx, ci, co] with
    xi = xo + dx - 1; out-of-range taps are dropped, which implements the zero
    padding along W.  The three blocks are concatenated along K so each conv
    becomes ONE MXU matmul.
    """
    _, _, ci, co = w_hwio.shape
    xs = np.arange(width)
    blocks = []
    for dy in range(3):
        m = jnp.zeros((width, ci, width, co), w_hwio.dtype)
        for dx in range(3):
            xi = xs + dx - 1
            ok = (xi >= 0) & (xi < width)
            blk = jnp.broadcast_to(w_hwio[dy, dx], (int(ok.sum()), ci, co))
            m = m.at[xi[ok], :, xs[ok], :].set(blk)
        blocks.append(m.reshape(width * ci, width * co))
    return jnp.concatenate(blocks, axis=0)


def _conv3x3(x, w_ref):
    """3x3 'same' conv on the merged (N, H, W*Ci) layout via one MXU matmul.

    x: (N, H, W*Ci) activations; w_ref: (3*W*Ci, W*Co) banded weight ref.
    Returns (N, H, W*Co) f32 raw conv output (no bias).  The H halo is two
    in-register zero rows; the W halo lives inside the band matrix.
    """
    n, h, m = x.shape
    zrow = jnp.zeros((n, 1, m), x.dtype)
    x_up = jnp.concatenate([zrow, x[:, :-1, :]], axis=1)   # input row h-1
    x_dn = jnp.concatenate([x[:, 1:, :], zrow], axis=1)    # input row h+1
    lhs = jnp.concatenate([x_up, x, x_dn], axis=-1).reshape(n * h, 3 * m)
    y = jnp.dot(lhs, w_ref[...], preferred_element_type=jnp.float32)
    return y.reshape(n, h, -1)


def _bn_relu(y, gamma, beta, inv_count, channels):
    """Training-mode BatchNorm + ReLU on merged-lane (N, H, W*C) activations.

    Statistics are global over (N, H, W) -- exact, not per-tile.  Lane index
    is x*C + c, so the per-channel fold across the W positions is a matmul of
    the (2, W*C) stats against an iota-built (W*C, W*C) same-channel mask;
    the same matmul also re-broadcasts the folded value back onto all W*C
    lanes so scale/shift apply elementwise.  (Variance via E[x^2]-E[x]^2 in
    f32 -- fine at this activation scale.)
    """
    n, h, wc = y.shape
    y2d = y.reshape(n * h, wc)
    stats = jnp.concatenate(
        [jnp.sum(y2d, axis=0, keepdims=True),
         jnp.sum(y2d * y2d, axis=0, keepdims=True)], axis=0)        # (2, WC)
    li = jax.lax.broadcasted_iota(jnp.int32, (wc, wc), 0) % channels
    lj = jax.lax.broadcasted_iota(jnp.int32, (wc, wc), 1) % channels
    fold = (li == lj).astype(jnp.float32)                            # (WC, WC)
    folded = jnp.dot(stats, fold, preferred_element_type=jnp.float32) * inv_count
    mean, ex2 = folded[0:1, :], folded[1:2, :]
    var = ex2 - mean * mean                  # biased variance (training BN)
    scale = gamma * jax.lax.rsqrt(var + BN_EPS)
    shift = beta - mean * scale
    return jnp.maximum(y2d * scale + shift, 0.0).reshape(n, h, wc)


def _double_conv_kernel(inv_count, cmid, cout,
                        x_ref, w1_ref, w2_ref,
                        g1_ref, b1_ref, g2_ref, b2_ref, o_ref):
    # x_ref : (N, H, W*Cin)        merged-lane input (whole batch, in VMEM)
    # w1_ref: (3*W*Cin,  W*Cmid)   dy-concatenated band weights for conv1
    # w2_ref: (3*W*Cmid, W*Cout)   dy-concatenated band weights for conv2
    # g*/b* : (1, W*C)             lane-tiled BN gamma/beta
    # o_ref : (N, H, W*Cout)
    x = x_ref[...].astype(MATMUL_DTYPE)
    y1 = _conv3x3(x, w1_ref)                                       # conv1
    y1 = _bn_relu(y1, g1_ref[...], b1_ref[...], inv_count, cmid)   # BN1+ReLU
    y2 = _conv3x3(y1.astype(MATMUL_DTYPE), w2_ref)                 # conv2
    y2 = _bn_relu(y2, g2_ref[...], b2_ref[...], inv_count, cout)   # BN2+ReLU
    o_ref[...] = y2.astype(o_ref.dtype)


def _vmem_limit_bytes(operands, out_nbytes):
    nbytes = out_nbytes + sum(
        int(np.prod(o.shape)) * jnp.dtype(o.dtype).itemsize for o in operands)
    try:
        phys = int(pltpu.get_tpu_info().vmem_capacity_bytes)
    except Exception:  # pragma: no cover - defensive fallback
        phys = 64 << 20            # v7x has the smallest per-TC VMEM
    # generous headroom for in-kernel temporaries (K-concat LHS, fold masks),
    # capped well below physical VMEM so the setting stays portable.
    return int(min(max(16 * nbytes, 4 << 20), phys // 2))


@jax.jit
def double_conv(x_nchw, params):
    """Pallas DoubleConv.  x_nchw: (N, Cin, H, W) f32 -> (N, Cout, H, W) f32."""
    w1, _b1, g1, be1, w2, _b2, g2, be2 = params  # conv biases cancel under BN
    N, Cin, H, W = x_nchw.shape
    Cmid, Cout = w1.shape[-1], w2.shape[-1]
    inv_count = 1.0 / float(N * H * W)

    # ---- wrapper-side layout plumbing (weights / per-channel vectors only) --
    x_m = jnp.transpose(x_nchw, (0, 2, 3, 1)).reshape(N, H, W * Cin)
    x_m = x_m.astype(MATMUL_DTYPE)
    wk1 = _band_weights_k(w1, W).astype(MATMUL_DTYPE)   # (3*W*Cin,  W*Cmid)
    wk2 = _band_weights_k(w2, W).astype(MATMUL_DTYPE)   # (3*W*Cmid, W*Cout)
    g1t, be1t = jnp.tile(g1, W)[None, :], jnp.tile(be1, W)[None, :]
    g2t, be2t = jnp.tile(g2, W)[None, :], jnp.tile(be2, W)[None, :]

    operands = (x_m, wk1, wk2, g1t, be1t, g2t, be2t)
    out_nbytes = N * H * W * Cout * 4

    # Single fused call, no grid: all operands live fully in VMEM, the
    # conv1/BN1/conv2/BN2 intermediates never touch HBM.
    out = pl.pallas_call(
        functools.partial(_double_conv_kernel, inv_count, Cmid, Cout),
        out_shape=jax.ShapeDtypeStruct((N, H, W * Cout), jnp.float32),
        compiler_params=pltpu.CompilerParams(
            vmem_limit_bytes=_vmem_limit_bytes(operands, out_nbytes)),
    )(*operands)

    # merged (N, H, W*Cout) -> NCHW
    return jnp.transpose(out.reshape(N, H, W, Cout), (0, 3, 1, 2))


def reference(x_nchw, params):
    """Pure-JAX reference matching the PyTorch forward (training-mode BN)."""
    w1, b1, g1, be1, w2, b2, g2, be2 = params

    def conv(x, w, b):
        wt = jnp.transpose(w, (3, 2, 0, 1))  # HWIO -> OIHW
        y = jax.lax.conv_general_dilated(
            x, wt, window_strides=(1, 1), padding="SAME",
            dimension_numbers=("NCHW", "OIHW", "NCHW"))
        return y + b[None, :, None, None]

    def bn_relu(y, gamma, beta):
        mean = jnp.mean(y, axis=(0, 2, 3), keepdims=True)
        var = jnp.mean((y - mean) ** 2, axis=(0, 2, 3), keepdims=True)
        y = (y - mean) / jnp.sqrt(var + BN_EPS)
        y = y * gamma[None, :, None, None] + beta[None, :, None, None]
        return jnp.maximum(y, 0.0)

    y = bn_relu(conv(x_nchw, w1, b1), g1, be1)
    y = bn_relu(conv(y, w2, b2), g2, be2)
    return y


def init_params(key, in_channels, out_channels):
    ks = jax.random.split(key, 8)
    # Conv weights stored HWIO: (3, 3, C_in, C_out)
    w1 = 0.1 * jax.random.normal(ks[0], (3, 3, in_channels, out_channels), jnp.float32)
    b1 = 0.1 * jax.random.normal(ks[1], (out_channels,), jnp.float32)
    g1 = 1.0 + 0.1 * jax.random.normal(ks[2], (out_channels,), jnp.float32)
    be1 = 0.1 * jax.random.normal(ks[3], (out_channels,), jnp.float32)
    w2 = 0.1 * jax.random.normal(ks[4], (3, 3, out_channels, out_channels), jnp.float32)
    b2 = 0.1 * jax.random.normal(ks[5], (out_channels,), jnp.float32)
    g2 = 1.0 + 0.1 * jax.random.normal(ks[6], (out_channels,), jnp.float32)
    be2 = 0.1 * jax.random.normal(ks[7], (out_channels,), jnp.float32)
    return (w1, b1, g1, be1, w2, b2, g2, be2)


if __name__ == "__main__":
    key = jax.random.PRNGKey(0)
    k_x, k_p = jax.random.split(key)

    N, Cin, Cout, H, W = 2, 4, 8, 16, 16
    x = jax.random.normal(k_x, (N, Cin, H, W), jnp.float32)
    params = init_params(k_p, Cin, Cout)

    out = jax.block_until_ready(double_conv(x, params))
    ref = jax.block_until_ready(reference(x, params))

    assert out.shape == (N, Cout, H, W), out.shape
    err = float(jnp.max(jnp.abs(out - ref)))
    assert jnp.allclose(out, ref, atol=1e-4, rtol=1e-4), err
    print("KERNEL_OK")
</pallas_src>

<mosaic_0001>
module attributes {stable_mosaic.version = 11 : i64} {
  func.func @_double_conv_kernel(%arg0: memref<2x16x64xf32, #tpu.memory_space<vmem>>, %arg1: memref<192x128xf32, #tpu.memory_space<vmem>>, %arg2: memref<384x128xf32, #tpu.memory_space<vmem>>, %arg3: memref<1x128xf32, #tpu.memory_space<vmem>>, %arg4: memref<1x128xf32, #tpu.memory_space<vmem>>, %arg5: memref<1x128xf32, #tpu.memory_space<vmem>>, %arg6: memref<1x128xf32, #tpu.memory_space<vmem>>, %arg7: memref<2x16x128xf32, #tpu.memory_space<vmem>>) attributes {dimension_semantics = [], scalar_prefetch = 0 : i64, scratch_operands = 0 : i64, tpu.core_type = #tpu.core_type<tc>} {
    %c0 = arith.constant 0 : index
    %c0_0 = arith.constant 0 : index
    %c0_1 = arith.constant 0 : index
    %0 = vector.load %arg0[%c0, %c0_0, %c0_1] : memref<2x16x64xf32, #tpu.memory_space<vmem>>, vector<2x16x64xf32>
    %cst = arith.constant 0.000000e+00 : f32
    %1 = vector.broadcast %cst : f32 to vector<2x1x64xf32>
    %2 = vector.extract_strided_slice %0 {offsets = [0, 0, 0], sizes = [2, 15, 64], strides = [1, 1, 1]} : vector<2x16x64xf32> to vector<2x15x64xf32>
    %3 = tpu.concatenate %1, %2 in 1 : vector<2x1x64xf32>, vector<2x15x64xf32> -> vector<2x16x64xf32>
    %4 = vector.extract_strided_slice %0 {offsets = [0, 1, 0], sizes = [2, 15, 64], strides = [1, 1, 1]} : vector<2x16x64xf32> to vector<2x15x64xf32>
    %5 = tpu.concatenate %4, %1 in 1 : vector<2x15x64xf32>, vector<2x1x64xf32> -> vector<2x16x64xf32>
    %6 = tpu.concatenate %3, %0, %5 in 2 : vector<2x16x64xf32>, vector<2x16x64xf32>, vector<2x16x64xf32> -> vector<2x16x192xf32>
    %7 = vector.shape_cast %6 : vector<2x16x192xf32> to vector<32x192xf32>
    %c0_2 = arith.constant 0 : index
    %c0_3 = arith.constant 0 : index
    %8 = vector.load %arg1[%c0_2, %c0_3] : memref<192x128xf32, #tpu.memory_space<vmem>>, vector<192x128xf32>
    %cst_4 = arith.constant dense<0.000000e+00> : vector<32x128xf32>
    %9 = tpu.matmul %7, %8, %cst_4 {dimension_numbers = #tpu.dot_dimension_numbers<[1], [0], [0], [1], [0, 0, 1, 1], [], []>} : vector<32x192xf32>, vector<192x128xf32>, vector<32x128xf32> -> vector<32x128xf32>
    %10 = vector.shape_cast %9 : vector<32x128xf32> to vector<2x16x128xf32>
    %c0_5 = arith.constant 0 : index
    %c0_6 = arith.constant 0 : index
    %11 = vector.load %arg3[%c0_5, %c0_6] : memref<1x128xf32, #tpu.memory_space<vmem>>, vector<1x128xf32>
    %c0_7 = arith.constant 0 : index
    %c0_8 = arith.constant 0 : index
    %12 = vector.load %arg4[%c0_7, %c0_8] : memref<1x128xf32, #tpu.memory_space<vmem>>, vector<1x128xf32>
    %13 = vector.shape_cast %10 : vector<2x16x128xf32> to vector<32x128xf32>
    %cst_9 = arith.constant dense<0.000000e+00> : vector<128xf32>
    %14 = vector.multi_reduction <add>, %13, %cst_9 [0] : vector<32x128xf32> to vector<128xf32>
    %15 = vector.shape_cast %14 : vector<128xf32> to vector<1x128xf32>
    %16 = arith.mulf %13, %13 : vector<32x128xf32>
    %cst_10 = arith.constant dense<0.000000e+00> : vector<128xf32>
    %17 = vector.multi_reduction <add>, %16, %cst_10 [0] : vector<32x128xf32> to vector<128xf32>
    %18 = vector.shape_cast %17 : vector<128xf32> to vector<1x128xf32>
    %19 = tpu.concatenate %15, %18 in 0 : vector<1x128xf32>, vector<1x128xf32> -> vector<2x128xf32>
    %20 = tpu.iota {dimensions = array<i32: 0>} : vector<128x128xi32>
    %c8_i32 = arith.constant 8 : i32
    %c0_i32 = arith.constant 0 : i32
    %21 = arith.cmpi eq, %c8_i32, %c0_i32 : i32
    %c1_i32 = arith.constant 1 : i32
    %22 = arith.select %21, %c1_i32, %c8_i32 : i32
    %23 = vector.broadcast %22 : i32 to vector<128x128xi32>
    %24 = arith.remsi %20, %23 : vector<128x128xi32>
    %c0_i32_11 = arith.constant 0 : i32
    %25 = vector.broadcast %c0_i32_11 : i32 to vector<128x128xi32>
    %26 = arith.cmpi ne, %24, %25 : vector<128x128xi32>
    %c0_i32_12 = arith.constant 0 : i32
    %27 = vector.broadcast %c0_i32_12 : i32 to vector<128x128xi32>
    %28 = arith.cmpi slt, %24, %27 : vector<128x128xi32>
    %c0_i32_13 = arith.constant 0 : i32
    %29 = arith.cmpi slt, %22, %c0_i32_13 : i32
    %30 = vector.broadcast %29 : i1 to vector<128x128xi1>
    %31 = vector.broadcast %30 : vector<128x128xi1> to vector<128x128xi1>
    %32 = arith.xori %28, %31 : vector<128x128xi1>
    %33 = arith.andi %32, %26 : vector<128x128xi1>
    %34 = vector.broadcast %22 : i32 to vector<128x128xi32>
    %35 = arith.addi %24, %34 : vector<128x128xi32>
    %36 = arith.select %33, %35, %24 : vector<128x128xi1>, vector<128x128xi32>
    %37 = tpu.iota {dimensions = array<i32: 1>} : vector<128x128xi32>
    %c8_i32_14 = arith.constant 8 : i32
    %c0_i32_15 = arith.constant 0 : i32
    %38 = arith.cmpi eq, %c8_i32_14, %c0_i32_15 : i32
    %c1_i32_16 = arith.constant 1 : i32
    %39 = arith.select %38, %c1_i32_16, %c8_i32_14 : i32
    %40 = vector.broadcast %39 : i32 to vector<128x128xi32>
    %41 = arith.remsi %37, %40 : vector<128x128xi32>
    %c0_i32_17 = arith.constant 0 : i32
    %42 = vector.broadcast %c0_i32_17 : i32 to vector<128x128xi32>
    %43 = arith.cmpi ne, %41, %42 : vector<128x128xi32>
    %c0_i32_18 = arith.constant 0 : i32
    %44 = vector.broadcast %c0_i32_18 : i32 to vector<128x128xi32>
    %45 = arith.cmpi slt, %41, %44 : vector<128x128xi32>
    %c0_i32_19 = arith.constant 0 : i32
    %46 = arith.cmpi slt, %39, %c0_i32_19 : i32
    %47 = vector.broadcast %46 : i1 to vector<128x128xi1>
    %48 = vector.broadcast %47 : vector<128x128xi1> to vector<128x128xi1>
    %49 = arith.xori %45, %48 : vector<128x128xi1>
    %50 = arith.andi %49, %43 : vector<128x128xi1>
    %51 = vector.broadcast %39 : i32 to vector<128x128xi32>
    %52 = arith.addi %41, %51 : vector<128x128xi32>
    %53 = arith.select %50, %52, %41 : vector<128x128xi1>, vector<128x128xi32>
    %54 = arith.cmpi eq, %36, %53 : vector<128x128xi32>
    %55 = arith.extui %54 : vector<128x128xi1> to vector<128x128xi32>
    %56 = arith.sitofp %55 : vector<128x128xi32> to vector<128x128xf32>
    %cst_20 = arith.constant dense<0.000000e+00> : vector<2x128xf32>
    %57 = tpu.matmul %19, %56, %cst_20 {dimension_numbers = #tpu.dot_dimension_numbers<[1], [0], [0], [1], [0, 0, 1, 1], [], []>} : vector<2x128xf32>, vector<128x128xf32>, vector<2x128xf32> -> vector<2x128xf32>
    %cst_21 = arith.constant 0.001953125 : f32
    %58 = vector.broadcast %cst_21 : f32 to vector<2x128xf32>
    %59 = arith.mulf %57, %58 : vector<2x128xf32>
    %60 = vector.extract_strided_slice %59 {offsets = [0, 0], sizes = [1, 128], strides = [1, 1]} : vector<2x128xf32> to vector<1x128xf32>
    %61 = vector.extract_strided_slice %59 {offsets = [1, 0], sizes = [1, 128], strides = [1, 1]} : vector<2x128xf32> to vector<1x128xf32>
    %62 = arith.mulf %60, %60 : vector<1x128xf32>
    %63 = arith.subf %61, %62 : vector<1x128xf32>
    %cst_22 = arith.constant 9.99999974E-6 : f32
    %64 = vector.broadcast %cst_22 : f32 to vector<1x128xf32>
    %65 = arith.addf %63, %64 : vector<1x128xf32>
    %66 = math.rsqrt %65 : vector<1x128xf32>
    %67 = arith.mulf %11, %66 : vector<1x128xf32>
    %68 = arith.mulf %60, %67 : vector<1x128xf32>
    %69 = arith.subf %12, %68 : vector<1x128xf32>
    %70 = vector.broadcast %67 : vector<1x128xf32> to vector<32x128xf32>
    %71 = arith.mulf %13, %70 : vector<32x128xf32>
    %72 = vector.broadcast %69 : vector<1x128xf32> to vector<32x128xf32>
    %73 = arith.addf %71, %72 : vector<32x128xf32>
    %cst_23 = arith.constant 0.000000e+00 : f32
    %74 = vector.broadcast %cst_23 : f32 to vector<32x128xf32>
    %75 = arith.maximumf %73, %74 : vector<32x128xf32>
    %76 = vector.shape_cast %75 : vector<32x128xf32> to vector<2x16x128xf32>
    %cst_24 = arith.constant 0.000000e+00 : f32
    %77 = vector.broadcast %cst_24 : f32 to vector<2x1x128xf32>
    %78 = vector.extract_strided_slice %76 {offsets = [0, 0, 0], sizes = [2, 15, 128], strides = [1, 1, 1]} : vector<2x16x128xf32> to vector<2x15x128xf32>
    %79 = tpu.concatenate %77, %78 in 1 : vector<2x1x128xf32>, vector<2x15x128xf32> -> vector<2x16x128xf32>
    %80 = vector.extract_strided_slice %76 {offsets = [0, 1, 0], sizes = [2, 15, 128], strides = [1, 1, 1]} : vector<2x16x128xf32> to vector<2x15x128xf32>
    %81 = tpu.concatenate %80, %77 in 1 : vector<2x15x128xf32>, vector<2x1x128xf32> -> vector<2x16x128xf32>
    %82 = tpu.concatenate %79, %76, %81 in 2 : vector<2x16x128xf32>, vector<2x16x128xf32>, vector<2x16x128xf32> -> vector<2x16x384xf32>
    %83 = vector.shape_cast %82 : vector<2x16x384xf32> to vector<32x384xf32>
    %c0_25 = arith.constant 0 : index
    %c0_26 = arith.constant 0 : index
    %84 = vector.load %arg2[%c0_25, %c0_26] : memref<384x128xf32, #tpu.memory_space<vmem>>, vector<384x128xf32>
    %cst_27 = arith.constant dense<0.000000e+00> : vector<32x128xf32>
    %85 = tpu.matmul %83, %84, %cst_27 {dimension_numbers = #tpu.dot_dimension_numbers<[1], [0], [0], [1], [0, 0, 1, 1], [], []>} : vector<32x384xf32>, vector<384x128xf32>, vector<32x128xf32> -> vector<32x128xf32>
    %86 = vector.shape_cast %85 : vector<32x128xf32> to vector<2x16x128xf32>
    %c0_28 = arith.constant 0 : index
    %c0_29 = arith.constant 0 : index
    %87 = vector.load %arg5[%c0_28, %c0_29] : memref<1x128xf32, #tpu.memory_space<vmem>>, vector<1x128xf32>
    %c0_30 = arith.constant 0 : index
    %c0_31 = arith.constant 0 : index
    %88 = vector.load %arg6[%c0_30, %c0_31] : memref<1x128xf32, #tpu.memory_space<vmem>>, vector<1x128xf32>
    %89 = vector.shape_cast %86 : vector<2x16x128xf32> to vector<32x128xf32>
    %cst_32 = arith.constant dense<0.000000e+00> : vector<128xf32>
    %90 = vector.multi_reduction <add>, %89, %cst_32 [0] : vector<32x128xf32> to vector<128xf32>
    %91 = vector.shape_cast %90 : vector<128xf32> to vector<1x128xf32>
    %92 = arith.mulf %89, %89 : vector<32x128xf32>
    %cst_33 = arith.constant dense<0.000000e+00> : vector<128xf32>
    %93 = vector.multi_reduction <add>, %92, %cst_33 [0] : vector<32x128xf32> to vector<128xf32>
    %94 = vector.shape_cast %93 : vector<128xf32> to vector<1x128xf32>
    %95 = tpu.concatenate %91, %94 in 0 : vector<1x128xf32>, vector<1x128xf32> -> vector<2x128xf32>
    %96 = tpu.iota {dimensions = array<i32: 0>} : vector<128x128xi32>
    %c8_i32_34 = arith.constant 8 : i32
    %c0_i32_35 = arith.constant 0 : i32
    %97 = arith.cmpi eq, %c8_i32_34, %c0_i32_35 : i32
    %c1_i32_36 = arith.constant 1 : i32
    %98 = arith.select %97, %c1_i32_36, %c8_i32_34 : i32
    %99 = vector.broadcast %98 : i32 to vector<128x128xi32>
    %100 = arith.remsi %96, %99 : vector<128x128xi32>
    %c0_i32_37 = arith.constant 0 : i32
    %101 = vector.broadcast %c0_i32_37 : i32 to vector<128x128xi32>
    %102 = arith.cmpi ne, %100, %101 : vector<128x128xi32>
    %c0_i32_38 = arith.constant 0 : i32
    %103 = vector.broadcast %c0_i32_38 : i32 to vector<128x128xi32>
    %104 = arith.cmpi slt, %100, %103 : vector<128x128xi32>
    %c0_i32_39 = arith.constant 0 : i32
    %105 = arith.cmpi slt, %98, %c0_i32_39 : i32
    %106 = vector.broadcast %105 : i1 to vector<128x128xi1>
    %107 = vector.broadcast %106 : vector<128x128xi1> to vector<128x128xi1>
    %108 = arith.xori %104, %107 : vector<128x128xi1>
    %109 = arith.andi %108, %102 : vector<128x128xi1>
    %110 = vector.broadcast %98 : i32 to vector<128x128xi32>
    %111 = arith.addi %100, %110 : vector<128x128xi32>
    %112 = arith.select %109, %111, %100 : vector<128x128xi1>, vector<128x128xi32>
    %113 = tpu.iota {dimensions = array<i32: 1>} : vector<128x128xi32>
    %c8_i32_40 = arith.constant 8 : i32
    %c0_i32_41 = arith.constant 0 : i32
    %114 = arith.cmpi eq, %c8_i32_40, %c0_i32_41 : i32
    %c1_i32_42 = arith.constant 1 : i32
    %115 = arith.select %114, %c1_i32_42, %c8_i32_40 : i32
    %116 = vector.broadcast %115 : i32 to vector<128x128xi32>
    %117 = arith.remsi %113, %116 : vector<128x128xi32>
    %c0_i32_43 = arith.constant 0 : i32
    %118 = vector.broadcast %c0_i32_43 : i32 to vector<128x128xi32>
    %119 = arith.cmpi ne, %117, %118 : vector<128x128xi32>
    %c0_i32_44 = arith.constant 0 : i32
    %120 = vector.broadcast %c0_i32_44 : i32 to vector<128x128xi32>
    %121 = arith.cmpi slt, %117, %120 : vector<128x128xi32>
    %c0_i32_45 = arith.constant 0 : i32
    %122 = arith.cmpi slt, %115, %c0_i32_45 : i32
    %123 = vector.broadcast %122 : i1 to vector<128x128xi1>
    %124 = vector.broadcast %123 : vector<128x128xi1> to vector<128x128xi1>
    %125 = arith.xori %121, %124 : vector<128x128xi1>
    %126 = arith.andi %125, %119 : vector<128x128xi1>
    %127 = vector.broadcast %115 : i32 to vector<128x128xi32>
    %128 = arith.addi %117, %127 : vector<128x128xi32>
    %129 = arith.select %126, %128, %117 : vector<128x128xi1>, vector<128x128xi32>
    %130 = arith.cmpi eq, %112, %129 : vector<128x128xi32>
    %131 = arith.extui %130 : vector<128x128xi1> to vector<128x128xi32>
    %132 = arith.sitofp %131 : vector<128x128xi32> to vector<128x128xf32>
    %cst_46 = arith.constant dense<0.000000e+00> : vector<2x128xf32>
    %133 = tpu.matmul %95, %132, %cst_46 {dimension_numbers = #tpu.dot_dimension_numbers<[1], [0], [0], [1], [0, 0, 1, 1], [], []>} : vector<2x128xf32>, vector<128x128xf32>, vector<2x128xf32> -> vector<2x128xf32>
    %cst_47 = arith.constant 0.001953125 : f32
    %134 = vector.broadcast %cst_47 : f32 to vector<2x128xf32>
    %135 = arith.mulf %133, %134 : vector<2x128xf32>
    %136 = vector.extract_strided_slice %135 {offsets = [0, 0], sizes = [1, 128], strides = [1, 1]} : vector<2x128xf32> to vector<1x128xf32>
    %137 = vector.extract_strided_slice %135 {offsets = [1, 0], sizes = [1, 128], strides = [1, 1]} : vector<2x128xf32> to vector<1x128xf32>
    %138 = arith.mulf %136, %136 : vector<1x128xf32>
    %139 = arith.subf %137, %138 : vector<1x128xf32>
    %cst_48 = arith.constant 9.99999974E-6 : f32
    %140 = vector.broadcast %cst_48 : f32 to vector<1x128xf32>
    %141 = arith.addf %139, %140 : vector<1x128xf32>
    %142 = math.rsqrt %141 : vector<1x128xf32>
    %143 = arith.mulf %87, %142 : vector<1x128xf32>
    %144 = arith.mulf %136, %143 : vector<1x128xf32>
    %145 = arith.subf %88, %144 : vector<1x128xf32>
    %146 = vector.broadcast %143 : vector<1x128xf32> to vector<32x128xf32>
    %147 = arith.mulf %89, %146 : vector<32x128xf32>
    %148 = vector.broadcast %145 : vector<1x128xf32> to vector<32x128xf32>
    %149 = arith.addf %147, %148 : vector<32x128xf32>
    %cst_49 = arith.constant 0.000000e+00 : f32
    %150 = vector.broadcast %cst_49 : f32 to vector<32x128xf32>
    %151 = arith.maximumf %149, %150 : vector<32x128xf32>
    %152 = vector.shape_cast %151 : vector<32x128xf32> to vector<2x16x128xf32>
    %c0_50 = arith.constant 0 : index
    %c0_51 = arith.constant 0 : index
    %c0_52 = arith.constant 0 : index
    %153 = vector.load %arg7[%c0_50, %c0_51, %c0_52] : memref<2x16x128xf32, #tpu.memory_space<vmem>>, vector<2x16x128xf32>
    tpu.vector_store %arg7[%c0_50, %c0_51, %c0_52], %152 {strides = array<i32>} : memref<2x16x128xf32, #tpu.memory_space<vmem>>, vector<2x16x128xf32>,
    return
  }
}

</mosaic_0001>

<bundles_post_ra>
// kernel: tile.23
= control target key start
LH: loop header
LB: loop body
LE: loop exit
PB: predicated region body
PF: predicated region fallthrough
CT: control target
= control target key end

     0   :  { %s28_s0 = inlined_call_operand.vmem [shape: f32[8], index: 0, kind: input, shape index: {}]   ;;  %s29_s1 = inlined_call_operand.vmem [shape: f32[16,8], index: 1, kind: output, shape index: {}]  }
   0x1   :  { %v4_v0 = vld [vmem:[%s28_s0] ss:$0 sm:$0xff] }
   0x2   :  { %5 = vst [vmem:[%s29_s1] sm:$0xff] %v4_v0  ;;  %8 = vst [vmem:[%s29_s1 + $0x8] sm:$0xff] %v4_v0 }

// kernel: tile.24
= control target key start
LH: loop header
LB: loop body
LE: loop exit
PB: predicated region body
PF: predicated region fallthrough
CT: control target
= control target key end

     0   :  { %s133_s10 = smov 120   ;;  %s134_s11 = smov 104   ;;  %vm3_vm0 = vcmask 64512   ;;  %vm9_vm1 = vcmask 1048512   ;;  %vm15_vm2 = vcmask 982912   ;;  %vm21_vm3 = vcmask 917312   ;;  %s209_s0 = inlined_call_operand.vmem [shape: f32[16,8], index: 0, kind: input, shape index: {}]   ;;  %s210_s1 = inlined_call_operand.vmem [shape: f32[1,128], index: 1, kind: output, shape index: {}]  }
   0x1   :  { %v103_v0 = vld [vmem:[%s209_s0 + $0xf] sm:$0x1]   ;;  %v105_v1 = vld [vmem:[%s209_s0 + $0xd] sm:$0x1]   ;;  %v104_v2 = vld [vmem:[%s209_s0 + $0xe] sm:$0x1]  }
   0x2   :  { %7 = vrot.lane.b32.xlu0 %v103_v0, %s133_s10  ;;  %19 = vrot.lane.b32.xlu1 %v105_v1, %s134_s11  ;;  %v106_v3 = vld [vmem:[%s209_s0 + $0xc] sm:$0x1]   ;;  %s135_s16 = smov 112   ;;  %s136_s17 = smov 96   ;;  %v107_v4 = vld [vmem:[%s209_s0 + $0xb] sm:$0x1]  }
   0x3   :  { %v108_v5 = vld [vmem:[%s209_s0 + $0xa] sm:$0x1]   ;;  %v2_v6 = vld [vmem:[%s209_s0] sm:$0x1]   ;;  %s137_s24 = smov 88   ;;  %s138_s25 = smov 80  }
   0x4   :  { %4 = vst.msk [vmem:[#allocation0] sm:$0x1] %vm3_vm0, %v2_v6   ;;  %v109_v7 = vld [vmem:[%s209_s0 + $0x9] sm:$0x1]   ;;  %v110_v8 = vld [vmem:[%s209_s0 + $0x8] sm:$0x1]  }
   0x5   :  { %s139_s30 = smov 72   ;;  %s140_s2 = smov 64   ;;  %v111_v9 = vld [vmem:[%s209_s0 + $0x7] sm:$0x1]   ;;  %v112_v10 = vld [vmem:[%s209_s0 + $0x6] sm:$0x1]  }
   0x6   :  { %13 = vrot.lane.b32.xlu0 %v104_v2, %s135_s16  ;;  %25 = vrot.lane.b32.xlu1 %v106_v3, %s136_s17  ;;  %s141_s7 = smov 56   ;;  %s142_s8 = smov 48   ;;  %v113_v11 = vld [vmem:[%s209_s0 + $0x5] sm:$0x1]   ;;  %v114_v12 = vld [vmem:[%s209_s0 + $0x4] sm:$0x1]  }
   0x7   :  { %s143_s13 = smov 40   ;;  %s144_s14 = smov 32   ;;  %v115_v13 = vld [vmem:[%s209_s0 + $0x3] sm:$0x1]   ;;  %v116_v14 = vld [vmem:[%s209_s0 + $0x2] sm:$0x1]  }
   0x8   :  { %s145_s19 = smov 24   ;;  %s146_s20 = smov 16   ;;  %v117_v15 = vld [vmem:[%s209_s0 + $0x1] sm:$0x1]   ;;  %vm27_vm4 = vcmask 851712   ;;  %vm33_vm5 = vcmask 786112  }
   0x9   :  { %s147_s0 = smov 8   ;;  %vm39_vm6 = vcmask 720512   ;;  %vm45_vm7 = vcmask 654912   ;;  %vm51_vm8 = vcmask 589312   ;;  %vm57_vm9 = vcmask 523712  }
   0xa   :  { %31 = vrot.lane.b32.xlu0 %v107_v4, %s137_s24  ;;  %37 = vrot.lane.b32.xlu1 %v108_v5, %s138_s25  ;;  %vm63_vm10 = vcmask 458112   ;;  %vm69_vm11 = vcmask 392512   ;;  %vm75_vm12 = vcmask 326912   ;;  %vm81_vm13 = vcmask 261312  }
   0xb   :  { %vm87_vm14 = vcmask 195712   ;;  %vm93_vm15 = vcmask 130112  }
   0xe   :  { %43 = vrot.lane.b32.xlu0 %v109_v7, %s139_s30  ;;  %49 = vrot.lane.b32.xlu1 %v110_v8, %s140_s2 }
  0x12   :  { %55 = vrot.lane.b32.xlu0 %v111_v9, %s141_s7  ;;  %61 = vrot.lane.b32.xlu1 %v112_v10, %s142_s8 }
  0x16   :  { %67 = vrot.lane.b32.xlu0 %v113_v11, %s143_s13  ;;  %73 = vrot.lane.b32.xlu1 %v114_v12, %s144_s14 }
  0x1a   :  { %79 = vrot.lane.b32.xlu0 %v115_v13, %s145_s19  ;;  %85 = vrot.lane.b32.xlu1 %v116_v14, %s146_s20 }
  0x1e   :  { %91 = vrot.lane.b32.xlu0 %v117_v15, %s147_s0 }
  0x74   :  { %v8_v16 = vpop.permute.xlu0 %7   ;;  %v20_v17 = vpop.permute.xlu1 %19  }
  0x75   :  { %10 = vst.msk [vmem:[#allocation0] sm:$0x1] %vm9_vm1, %v8_v16  }
  0x78   :  { %v14_v18 = vpop.permute.xlu0 %13   ;;  %v26_v19 = vpop.permute.xlu1 %25  }
  0x79   :  { %16 = vst.msk [vmem:[#allocation0] sm:$0x1] %vm15_vm2, %v14_v18  }
  0x7a   :  { %22 = vst.msk [vmem:[#allocation0] sm:$0x1] %vm21_vm3, %v20_v17  }
  0x7b   :  { %28 = vst.msk [vmem:[#allocation0] sm:$0x1] %vm27_vm4, %v26_v19  }
  0x7c   :  { %v32_v20 = vpop.permute.xlu0 %31   ;;  %v38_v21 = vpop.permute.xlu1 %37  }
  0x7d   :  { %34 = vst.msk [vmem:[#allocation0] sm:$0x1] %vm33_vm5, %v32_v20  }
  0x7e   :  { %40 = vst.msk [vmem:[#allocation0] sm:$0x1] %vm39_vm6, %v38_v21  }
  0x80   :  { %v44_v22 = vpop.permute.xlu0 %43   ;;  %v50_v23 = vpop.permute.xlu1 %49  }
  0x81   :  { %46 = vst.msk [vmem:[#allocation0] sm:$0x1] %vm45_vm7, %v44_v22  }
  0x82   :  { %52 = vst.msk [vmem:[#allocation0] sm:$0x1] %vm51_vm8, %v50_v23  }
  0x84   :  { %v56_v24 = vpop.permute.xlu0 %55   ;;  %v62_v25 = vpop.permute.xlu1 %61  }
  0x85   :  { %58 = vst.msk [vmem:[#allocation0] sm:$0x1] %vm57_vm9, %v56_v24  }
  0x86   :  { %64 = vst.msk [vmem:[#allocation0] sm:$0x1] %vm63_vm10, %v62_v25  }
  0x88   :  { %v68_v26 = vpop.permute.xlu0 %67   ;;  %v74_v27 = vpop.permute.xlu1 %73  }
  0x89   :  { %70 = vst.msk [vmem:[#allocation0] sm:$0x1] %vm69_vm11, %v68_v26  }
  0x8a   :  { %76 = vst.msk [vmem:[#allocation0] sm:$0x1] %vm75_vm12, %v74_v27  }
  0x8c   :  { %v80_v28 = vpop.permute.xlu0 %79   ;;  %v86_v29 = vpop.permute.xlu1 %85  }
  0x8d   :  { %82 = vst.msk [vmem:[#allocation0] sm:$0x1] %vm81_vm13, %v80_v28  }
  0x8e   :  { %88 = vst.msk [vmem:[#allocation0] sm:$0x1] %vm87_vm14, %v86_v29  }
  0x90   :  { %v92_v30 = vpop.permute.xlu0 %91  }
  0x91   :  { %94 = vst.msk [vmem:[#allocation0] sm:$0x1] %vm93_vm15, %v92_v30  }
  0x98   :  { %v99_v31 = vld [vmem:[#allocation0] sm:$0x1] }
  0x99   :  { %102 = vst [vmem:[%s210_s1] sm:$0x1] %v99_v31 }

// kernel: double_conv.1
= control target key start
LH: loop header
LB: loop body
LE: loop exit
PB: predicated region body
PF: predicated region fallthrough
CT: control target
= control target key end

     0   :  { %v1286_v3 = vmov 0.0   ;;  %vm1963_vm0 = vcmask 1046528   ;;  %vm70_vm1 = vcmask 523264   ;;  %vm1964_vm2 = vcmask 1040384   ;;  %s1287_s30 = smov 64   ;;  %s1955_s0 = inlined_call_operand.vmem [shape: f32[2,16,64], index: 0, kind: input, shape index: {}]   ;;  %s1956_s1 = inlined_call_operand.vmem [shape: f32[192,128], index: 1, kind: input, shape index: {}]   ;;  %s1957_s2 = inlined_call_operand.vmem [shape: f32[384,128], index: 2, kind: input, shape index: {}]   ;;  %s1958_s3 = inlined_call_operand.vmem [shape: f32[1,128], index: 3, kind: input, shape index: {}]   ;;  %s1959_s4 = inlined_call_operand.vmem [shape: f32[1,128], index: 4, kind: input, shape index: {}]   ;;  %s1960_s5 = inlined_call_operand.vmem [shape: f32[1,128], index: 5, kind: input, shape index: {}]   ;;  %s1961_s6 = inlined_call_operand.vmem [shape: f32[1,128], index: 6, kind: input, shape index: {}]   ;;  %s1962_s7 = inlined_call_operand.vmem [shape: f32[2,16,128], index: 7, kind: output, shape index: {}]  }
   0x1   :  { %v1334_v0 = vld [vmem:[%s1955_s0] sm:$0xff]  ;;  %v1339_v1 = vld [vmem:[%s1955_s0 + $0x8] sm:$0xff]  ;;  %v1344_v2 = vld [vmem:[%s1955_s0 + $0x10] sm:$0xff]  ;;  %109 = vmatprep.subr.mxu0 %v1286_v3  ;;  %1169 = vmatprep.subr.mxu1 %v1286_v3  ;;  %v219_v20 = vlaneseq  ;;  %v1288_v32 = vmov 1.0  }
   0x2   :  { %58 = vrot.lane.b32.xlu0 %v1334_v0, %s1287_s30  ;;  %v35_v4 = vrot.slane %v1334_v0, 7  ;;  %v48_v5 = vrot.slane %v1334_v0, 1  ;;  %v36_v6 = vrot.slane %v1339_v1, 7  ;;  %v49_v7 = vrot.slane %v1339_v1, 1  ;;  %62 = vrot.lane.b32.xlu1 %v1344_v2, %s1287_s30  ;;  %v1357_v8 = vld [vmem:[%s1955_s0 + $0x18] sm:$0xff]  ;;  %v89_v14 = vld [vmem:[%s1956_s1 + $0x70] sm:$0xff] }
   0x3   :  { %v90_v9 = vld [vmem:[%s1956_s1 + $0x78] sm:$0xff]  ;;  %v38_v10 = vrot.slane %v1344_v2, 7  ;;  %v51_v11 = vrot.slane %v1344_v2, 1  ;;  %v39_v12 = vrot.slane %v1357_v8, 7  ;;  %v52_v13 = vrot.slane %v1357_v8, 1  ;;  %v88_v17 = vld [vmem:[%s1956_s1 + $0x68] sm:$0xff] }
   0x4   :  { %110 = vmatpush1.msra.mxu0 %v90_v9  ;;  %v50_v15 = vsel %vm1963_vm0, %v48_v5, %v49_v7  ;;  %v1376_v16 = vsel %vm1964_vm2, %v35_v4, %v36_v6  ;;  %v87_v21 = vld [vmem:[%s1956_s1 + $0x60] sm:$0xff]  ;;  %v1398_v22 = vshrl.u32 %v219_v20, 7  ;;  %v429_v23 = vand.u32 127, %v219_v20  ;;  %v86_v24 = vld [vmem:[%s1956_s1 + $0x58] sm:$0xff]  ;;  %v85_v27 = vld [vmem:[%s1956_s1 + $0x50] sm:$0xff] }
   0x5   :  { %111 = vmatprep.subr.mxu0 %v1286_v3  ;;  %1013 = vmatprep.mubr.msk.f32.mxu0 %vm70_vm1, %v50_v15  ;;  %v1385_v18 = vsel %vm1963_vm0, %v51_v11, %v52_v13  ;;  %v1390_v19 = vsel %vm1964_vm2, %v38_v10, %v39_v12  ;;  %v84_v29 = vld [vmem:[%s1956_s1 + $0x48] sm:$0xff]  ;;  %v83_v31 = vld [vmem:[%s1956_s1 + $0x40] sm:$0xff]  ;;  %v82_v33 = vld [vmem:[%s1956_s1 + $0x38] sm:$0xff]  ;;  %v45_v49 = vsel %vm1964_vm2, 0.0, %v35_v4  ;;  %v56_v51 = vsel %vm1963_vm0, %v49_v7, 0.0 }
   0x6   :  { %112 = vmatpush1.msra.mxu0 %v89_v14  ;;  %60 = vrot.lane.b32.xlu0 %v1339_v1, %s1287_s30  ;;  %v235_v25 = vadd.s32 120, %v1398_v22  ;;  %v1405_v26 = vand.u32 7, %v429_v23  ;;  %v81_v34 = vld [vmem:[%s1956_s1 + $0x30] sm:$0xff]  ;;  %v80_v35 = vld [vmem:[%s1956_s1 + $0x28] sm:$0xff]  ;;  %v79_v36 = vld [vmem:[%s1956_s1 + $0x20] sm:$0xff]  ;;  %v46_v55 = vsel %vm1964_vm2, 0.0, %v38_v10 }
   0x7   :  { %64 = vrot.lane.b32.xlu1 %v1357_v8, %s1287_s30  ;;  %113 = vmatprep.subr.mxu0 %v1286_v3  ;;  %v78_v37 = vld [vmem:[%s1956_s1 + $0x18] sm:$0xff]  ;;  %v77_v38 = vld [vmem:[%s1956_s1 + $0x10] sm:$0xff]  ;;  %v76_v39 = vld [vmem:[%s1956_s1 + $0x8] sm:$0xff]  ;;  %v57_v59 = vsel %vm1963_vm0, %v52_v13, 0.0  ;;  %v234_v61 = vadd.s32 112, %v1398_v22  ;;  %v233_v63 = vadd.s32 104, %v1398_v22 }
   0x8   :  { %114 = vmatpush1.msra.mxu0 %v88_v17  ;;  %v345_v28 = vand.u32 7, %v235_v25  ;;  %v75_v40 = vld [vmem:[%s1956_s1] sm:$0xff]  ;;  %v98_v41 = vld [vmem:[%s1956_s1 + $0xb8] sm:$0xff]  ;;  %v97_v42 = vld [vmem:[%s1956_s1 + $0xb0] sm:$0xff]  ;;  %v232_v2 = vadd.s32 96, %v1398_v22  ;;  %v231_v6 = vadd.s32 88, %v1398_v22 }
   0x9   :  { %115 = vmatprep.subr.mxu0 %v1286_v3  ;;  %v96_v43 = vld [vmem:[%s1956_s1 + $0xa8] sm:$0xff]  ;;  %v95_v44 = vld [vmem:[%s1956_s1 + $0xa0] sm:$0xff]  ;;  %v94_v45 = vld [vmem:[%s1956_s1 + $0x98] sm:$0xff]  ;;  %v338_v62 = vand.u32 7, %v234_v61  ;;  %v331_v1 = vand.u32 7, %v233_v63  ;;  %v230_v9 = vadd.s32 80, %v1398_v22 }
   0xa   :  { %116 = vmatpush1.msra.mxu0 %v87_v21  ;;  %vm1416_vm3 = vcmp.eq.s32.totalorder %v345_v28, %v1405_v26  ;;  %v93_v46 = vld [vmem:[%s1956_s1 + $0x90] sm:$0xff]  ;;  %v92_v47 = vld [vmem:[%s1956_s1 + $0x88] sm:$0xff]  ;;  %v91_v48 = vld [vmem:[%s1956_s1 + $0x80] sm:$0xff]  ;;  %v324_v5 = vand.u32 7, %v232_v2  ;;  %v317_v8 = vand.u32 7, %v231_v6  ;;  %v229_v12 = vadd.s32 72, %v1398_v22 }
   0xb   :  { %117 = vmatprep.subr.mxu0 %v1286_v3  ;;  %1170 = vmatpush3.msk.msra.mxu1 %vm1416_vm3, %v1288_v32  ;;  %vm1518_vm4 = vcmp.eq.s32.totalorder %v338_v62, %v1405_v26  ;;  %vm1528_vm5 = vcmp.eq.s32.totalorder %v331_v1, %v1405_v26  ;;  %v310_v11 = vand.u32 7, %v230_v9  ;;  %v228_v15 = vadd.s32 64, %v1398_v22 }
   0xc   :  { %118 = vmatpush1.msra.mxu0 %v86_v24  ;;  %1171 = vmatprep.subr.mxu1 %v1286_v3  ;;  %vm1538_vm6 = vcmp.eq.s32.totalorder %v324_v5, %v1405_v26  ;;  %vm1548_vm7 = vcmp.eq.s32.totalorder %v317_v8, %v1405_v26  ;;  %v303_v14 = vand.u32 7, %v229_v12  ;;  %v226_v21 = vadd.s32 48, %v1398_v22 }
   0xd   :  { %119 = vmatprep.subr.mxu0 %v1286_v3  ;;  %1172 = vmatpush3.msk.msra.mxu1 %vm1518_vm4, %v1288_v32  ;;  %vm1558_vm8 = vcmp.eq.s32.totalorder %v310_v11, %v1405_v26  ;;  %v296_v17 = vand.u32 7, %v228_v15  ;;  %v225_v25 = vadd.s32 40, %v1398_v22 }
   0xe   :  { %120 = vmatpush1.msra.mxu0 %v85_v27  ;;  %1173 = vmatprep.subr.mxu1 %v1286_v3  ;;  %vm1568_vm9 = vcmp.eq.s32.totalorder %v303_v14, %v1405_v26  ;;  %v282_v24 = vand.u32 7, %v226_v21  ;;  %v655_v21 = vld [vmem:[%s1957_s2 + $0x78] sm:$0xff] }
   0xf   :  { %121 = vmatprep.subr.mxu0 %v1286_v3  ;;  %1174 = vmatpush3.msk.msra.mxu1 %vm1528_vm5, %v1288_v32  ;;  %vm1578_vm10 = vcmp.eq.s32.totalorder %v296_v17, %v1405_v26  ;;  %v275_v28 = vand.u32 7, %v225_v25  ;;  %v687_v25 = vld [vmem:[%s1957_s2 + $0x178] sm:$0xff] }
  0x10   :  { %122 = vmatpush1.msra.mxu0 %v84_v29  ;;  %1175 = vmatprep.subr.mxu1 %v1286_v3  ;;  %vm1598_vm12 = vcmp.eq.s32.totalorder %v282_v24, %v1405_v26  ;;  %v224_v29 = vadd.s32 32, %v1398_v22  ;;  %v670_v24 = vld [vmem:[%s1957_s2 + $0xf0] sm:$0xff] }
  0x11   :  { %123 = vmatprep.subr.mxu0 %v1286_v3  ;;  %1176 = vmatpush3.msk.msra.mxu1 %vm1538_vm6, %v1288_v32  ;;  %vm1608_vm13 = vcmp.eq.s32.totalorder %v275_v28, %v1405_v26  ;;  %v654_v28 = vld [vmem:[%s1957_s2 + $0x70] sm:$0xff] }
  0x12   :  { %124 = vmatpush1.msra.mxu0 %v83_v31  ;;  %1177 = vmatprep.subr.mxu1 %v1286_v3 }
  0x13   :  { %125 = vmatprep.subr.mxu0 %v1286_v3  ;;  %1178 = vmatpush3.msk.msra.mxu1 %vm1548_vm7, %v1288_v32 }
  0x14   :  { %126 = vmatpush1.msra.mxu0 %v82_v33  ;;  %1179 = vmatprep.subr.mxu1 %v1286_v3  ;;  %v268_v33 = vand.u32 7, %v224_v29  ;;  %v669_v29 = vld [vmem:[%s1957_s2 + $0xe8] sm:$0xff] }
  0x15   :  { %127 = vmatprep.subr.mxu0 %v1286_v3  ;;  %1180 = vmatpush3.msk.msra.mxu1 %vm1558_vm8, %v1288_v32 }
  0x16   :  { %128 = vmatpush1.msra.mxu0 %v81_v34  ;;  %1181 = vmatprep.subr.mxu1 %v1286_v3  ;;  %v223_v34 = vadd.s32 24, %v1398_v22  ;;  %vm1618_vm14 = vcmp.eq.s32.totalorder %v268_v33, %v1405_v26  ;;  %v686_v33 = vld [vmem:[%s1957_s2 + $0x170] sm:$0xff] }
  0x17   :  { %129 = vmatprep.subr.mxu0 %v1286_v3  ;;  %1182 = vmatpush3.msk.msra.mxu1 %vm1568_vm9, %v1288_v32 }
  0x18   :  { %130 = vmatpush1.msra.mxu0 %v80_v35  ;;  %1183 = vmatprep.subr.mxu1 %v1286_v3  ;;  %v1993_v35 = vmov 0 }
  0x19   :  { %131 = vmatprep.subr.mxu0 %v1286_v3  ;;  %1184 = vmatpush3.msk.msra.mxu1 %vm1578_vm10, %v1288_v32  ;;  %v1994_v35 = vsel %vm1618_vm14, 4294967295, %v1993_v35 }
  0x1a   :  { %132 = vmatpush1.msra.mxu0 %v79_v36  ;;  %1185 = vmatprep.subr.mxu1 %v1286_v3  ;;  %v261_v36 = vand.u32 7, %v223_v34  ;;  %v653_v34 = vld [vmem:[%s1957_s2 + $0x68] sm:$0xff] }
  0x1b   :  { %133 = vmatprep.subr.mxu0 %v1286_v3 }
  0x1c   :  { %134 = vmatpush1.msra.mxu0 %v78_v37  ;;  %v222_v37 = vadd.s32 16, %v1398_v22  ;;  %vm1629_vm15 = vcmp.eq.s32.totalorder %v261_v36, %v1405_v26  ;;  %v668_v36 = vld [vmem:[%s1957_s2 + $0xe0] sm:$0xff] }
  0x1d   :  { %135 = vmatprep.subr.mxu0 %v1286_v3 }
  0x1e   :  { %136 = vmatpush1.msra.mxu0 %v77_v38  ;;  %v221_v38 = vadd.s32 8, %v1398_v22 }
  0x1f   :  { %137 = vmatprep.subr.mxu0 %v1286_v3 }
  0x20   :  { %138 = vmatpush1.msra.mxu0 %v76_v39  ;;  %v1995_v39 = vmov 0 }
  0x21   :  { %139 = vmatprep.subr.mxu0 %v1286_v3  ;;  %v1996_v39 = vsel %vm1629_vm15, 4294967295, %v1995_v39 }
  0x22   :  { %140 = vmatpush1.msra.mxu0 %v75_v40  ;;  %v254_v40 = vand.u32 7, %v222_v37  ;;  %v685_v37 = vld [vmem:[%s1957_s2 + $0x168] sm:$0xff] }
  0x23   :  { %157 = vmatprep.subr.mxu0 %v1286_v3 }
  0x24   :  { %158 = vmatpush2.msra.mxu0 %v98_v41  ;;  %v240_v41 = vand.u32 7, %v1398_v22  ;;  %vm1641_vm0 = vcmp.eq.s32.totalorder %v254_v40, %v1405_v26  ;;  %v667_v40 = vld [vmem:[%s1957_s2 + $0xd8] sm:$0xff] }
  0x25   :  { %159 = vmatprep.subr.mxu0 %v1286_v3 }
  0x26   :  { %160 = vmatpush2.msra.mxu0 %v97_v42  ;;  %v247_v42 = vand.u32 7, %v221_v38  ;;  %v652_v38 = vld [vmem:[%s1957_s2 + $0x60] sm:$0xff] }
  0x27   :  { %161 = vmatprep.subr.mxu0 %v1286_v3 }
  0x28   :  { %162 = vmatpush2.msra.mxu0 %v96_v43  ;;  %v1997_v43 = vmov 0  ;;  %vm1649_vm2 = vcmp.eq.s32.totalorder %v247_v42, %v1405_v26  ;;  %v651_v42 = vld [vmem:[%s1957_s2 + $0x58] sm:$0xff] }
  0x29   :  { %163 = vmatprep.subr.mxu0 %v1286_v3  ;;  %v1998_v43 = vsel %vm1641_vm0, 4294967295, %v1997_v43 }
  0x2a   :  { %164 = vmatpush2.msra.mxu0 %v95_v44  ;;  %v1999_v44 = vmov 0 }
  0x2b   :  { %165 = vmatprep.subr.mxu0 %v1286_v3  ;;  %v2000_v44 = vsel %vm1649_vm2, 4294967295, %v1999_v44 }
  0x2c   :  { %166 = vmatpush2.msra.mxu0 %v94_v45  ;;  %v2001_v45 = vmov 0 }
  0x2d   :  { %167 = vmatprep.subr.mxu0 %v1286_v3 }
  0x2e   :  { %168 = vmatpush2.msra.mxu0 %v93_v46 }
  0x2f   :  { %169 = vmatprep.subr.mxu0 %v1286_v3 }
  0x30   :  { %170 = vmatpush2.msra.mxu0 %v92_v47 }
  0x31   :  { %171 = vmatprep.subr.mxu0 %v1286_v3 }
  0x32   :  { %172 = vmatpush2.msra.mxu0 %v91_v48 }
  0x33   :  { %1204 = vmatprep.subr.mxu0 %v687_v25 }
  0x74   :  { %v59_v50 = vpop.permute.xlu0 %58  ;;  %v63_v53 = vpop.permute.xlu1 %62 }
  0x75   :  { %v71_v52 = vsel %vm70_vm1, %v45_v49, %v59_v50  ;;  %v73_v57 = vsel %vm70_vm1, %v46_v55, %v63_v53 }
  0x76   :  { %174 = vmatmul.mubr.f32.vlgmr.msra.gmra.mxu0 %v71_v52 }
  0x77   :  { %1014 = vmatprep.mubr.msk.f32.mxu0 %vm70_vm1, %v56_v51  ;;  %1205 = vmatpush3.msra.mxu0 %v687_v25  ;;  %v656_v25 = vld [vmem:[%s1957_s2 + $0x80] sm:$0xff] }
  0x78   :  { %v61_v54 = vpop.permute.xlu0 %60  ;;  %1206 = vmatprep.subr.mxu0 %v686_v33 }
  0x79   :  { %v72_v56 = vsel %vm70_vm1, %v1376_v16, %v61_v54  ;;  %v65_v58 = vpop.permute.xlu1 %64  ;;  %1207 = vmatpush3.msra.mxu0 %v686_v33  ;;  %v672_v33 = vld [vmem:[%s1957_s2 + $0x100] sm:$0xff] }
  0x7a   :  { %179 = vmatmul.mubr.f32.gmra.mxu0 %v72_v56  ;;  %v74_v60 = vsel %vm70_vm1, %v1390_v19, %v65_v58  ;;  %1208 = vmatprep.subr.mxu0 %v685_v37 }
  0x7b   :  { %1015 = vmatprep.mubr.msk.f32.mxu0 %vm70_vm1, %v1385_v18  ;;  %v227_v18 = vadd.s32 56, %v1398_v22  ;;  %1209 = vmatpush3.msra.mxu0 %v685_v37 }
  0x7d   :  { %v289_v20 = vand.u32 7, %v227_v18 }
  0x7e   :  { %184 = vmatmul.mubr.f32.gmra.mxu0 %v73_v57 }
  0x7f   :  { %1016 = vmatprep.mubr.msk.f32.mxu0 %vm70_vm1, %v57_v59  ;;  %vm1588_vm11 = vcmp.eq.s32.totalorder %v289_v20, %v1405_v26  ;;  %vm1965_vm1 = vmmov 0   ;;  %v671_v20 = vld [vmem:[%s1957_s2 + $0xf8] sm:$0xff] }
  0x80   :  { %1186 = vmatpush3.msk.msra.mxu1 %vm1588_vm11, %v1288_v32  ;;  %1201 = vmatprep.mubr.msk.f32.mxu1 %vm1965_vm1, %v1286_v3  ;;  %vm1655_vm1 = vcmp.eq.s32.totalorder %v240_v41, %v1405_v26  ;;  %v684_v41 = vld [vmem:[%s1957_s2 + $0x160] sm:$0xff] }
  0x81   :  { %1187 = vmatprep.subr.mxu1 %v1286_v3  ;;  %v2002_v45 = vsel %vm1655_vm1, 4294967295, %v2001_v45  ;;  %1210 = vmatprep.subr.mxu0 %v684_v41 }
  0x82   :  { %189 = vmatmul.mubr.f32.gmra.mxu0 %v74_v60  ;;  %1188 = vmatpush3.msk.msra.mxu1 %vm1598_vm12, %v1288_v32 }
  0x83   :  { %1189 = vmatprep.subr.mxu1 %v1286_v3  ;;  %1211 = vmatpush3.msra.mxu0 %v684_v41 }
  0x84   :  { %1190 = vmatpush3.msk.msra.mxu1 %vm1608_vm13, %v1288_v32 }
  0x85   :  { %1191 = vmatprep.subr.mxu1 %v1286_v3 }
  0x86   :  { %1192 = vmatpush3.msk.msra.mxu1 %vm1618_vm14, %v1288_v32  ;;  %vm2009_vm14 = vcmask 1040384  }
  0x87   :  { %1193 = vmatprep.subr.mxu1 %v1286_v3 }
  0x88   :  { %1194 = vmatpush3.msk.msra.mxu1 %vm1629_vm15, %v1288_v32 }
  0x89   :  { %1195 = vmatprep.subr.mxu1 %v1286_v3 }
  0x8a   :  { %1196 = vmatpush3.msk.msra.mxu1 %vm1641_vm0, %v1288_v32  ;;  %vm2006_vm0 = vcmask 1046528  }
  0x8b   :  { %1197 = vmatprep.subr.mxu1 %v1286_v3  ;;  %vm2007_vm15 = vmmov %vm2006_vm0 }
  0x8c   :  { %1198 = vmatpush3.msk.msra.mxu1 %vm1649_vm2, %v1288_v32 }
  0x8d   :  { %1199 = vmatprep.subr.mxu1 %v1286_v3 }
  0x8e   :  { %1200 = vmatpush3.msk.msra.mxu1 %vm1655_vm1, %v1288_v32  ;;  %vm2003_vm1 = vcmask 1040384  }
  0x8f   :  { %1088 = vmatprep.subr.mxu1 %v671_v20  ;;  %v657_v20 = vld [vmem:[%s1957_s2 + $0x88] sm:$0xff]  ;;  %vm1853_vm2 = vmneg %vm2003_vm1 }
 0x136   :  { %v1666_v46 = vpop.f32.mrf.mxu0 }
 0x137   :  { %v205_v51 = vmul.f32 %v1666_v46, %v1666_v46 }
 0x138   :  { %v177_v47 = vpop.f32.mrf.mxu0 }
 0x139   :  { %v666_v47 = vld [vmem:[%s1957_s2 + $0xd0] sm:$0xff] }
 0x13a   :  { %v1668_v48 = vpop.f32.mrf.mxu0 }
 0x13b   :  { %v206_v26 = vmul.f32 %v1668_v48, %v1668_v48  ;;  %v196_v52 = vadd.f32 %v1668_v48, %v1666_v46 }
 0x13c   :  { %v182_v49 = vpop.f32.mrf.mxu0 }
 0x13d   :  { %v209_v55 = vadd.f32 %v206_v26, %v205_v51  ;;  %v683_v49 = vld [vmem:[%s1957_s2 + $0x158] sm:$0xff]  ;;  %v650_v26 = vld [vmem:[%s1957_s2 + $0x50] sm:$0xff]  ;;  %v665_v51 = vld [vmem:[%s1957_s2 + $0xc8] sm:$0xff] }
 0x13e   :  { %v1672_v50 = vpop.f32.mrf.mxu0  ;;  %1212 = vmatprep.subr.mxu0 %v683_v49 }
 0x13f   :  { %v207_v53 = vmul.f32 %v1672_v50, %v1672_v50  ;;  %v197_v56 = vadd.f32 %v196_v52, %v1672_v50  ;;  %1213 = vmatpush3.msra.mxu0 %v683_v49  ;;  %v682_v52 = vld [vmem:[%s1957_s2 + $0x150] sm:$0xff] }
 0x140   :  { %v187_v54 = vpop.f32.mrf.mxu0  ;;  %1214 = vmatprep.subr.mxu0 %v682_v52 }
 0x141   :  { %v210_v58 = vadd.f32 %v209_v55, %v207_v53  ;;  %v649_v53 = vld [vmem:[%s1957_s2 + $0x48] sm:$0xff]  ;;  %1215 = vmatpush3.msra.mxu0 %v682_v52  ;;  %v664_v54 = vld [vmem:[%s1957_s2 + $0xc0] sm:$0xff] }
 0x142   :  { %v1681_v57 = vpop.f32.mrf.mxu0  ;;  %v681_v55 = vld [vmem:[%s1957_s2 + $0x148] sm:$0xff] }
 0x143   :  { %v198_v59 = vadd.f32 %v197_v56, %v1681_v57  ;;  %v208_v60 = vmul.f32 %v1681_v57, %v1681_v57  ;;  %1216 = vmatprep.subr.mxu0 %v681_v55  ;;  %v648_v56 = vld [vmem:[%s1957_s2 + $0x40] sm:$0xff] }
 0x144   :  { %v192_v61 = vpop.f32.mrf.mxu0  ;;  %1217 = vmatpush3.msra.mxu0 %v681_v55  ;;  %v194_v55 = vld [vmem:[%s1958_s3] sm:$0x1] }
 0x145   :  { %v199_v62 = vrot.slane %v198_v59, 4  ;;  %v211_v63 = vadd.f32 %v210_v58, %v208_v60  ;;  %v663_v58 = vld [vmem:[%s1957_s2 + $0xb8] sm:$0xff]  ;;  %v662_v61 = vld [vmem:[%s1957_s2 + $0xb0] sm:$0xff] }
 0x146   :  { %v647_v60 = vld [vmem:[%s1957_s2 + $0x38] sm:$0xff] }
 0x147   :  { %v200_v1 = vadd.f32 %v199_v62, %v198_v59  ;;  %v212_v2 = vrot.slane %v211_v63, 4  ;;  %v680_v59 = vld [vmem:[%s1957_s2 + $0x140] sm:$0xff]  ;;  %v679_v62 = vld [vmem:[%s1957_s2 + $0x138] sm:$0xff] }
 0x148   :  { %1218 = vmatprep.subr.mxu0 %v680_v59 }
 0x149   :  { %v201_v5 = vrot.slane %v200_v1, 2  ;;  %v213_v6 = vadd.f32 %v212_v2, %v211_v63  ;;  %1219 = vmatpush3.msra.mxu0 %v680_v59  ;;  %v646_v63 = vld [vmem:[%s1957_s2 + $0x30] sm:$0xff] }
 0x14a   :  { %1220 = vmatprep.subr.mxu0 %v679_v62  ;;  %v678_v2 = vld [vmem:[%s1957_s2 + $0x130] sm:$0xff] }
 0x14b   :  { %v202_v8 = vadd.f32 %v201_v5, %v200_v1  ;;  %v214_v9 = vrot.slane %v213_v6, 2  ;;  %1221 = vmatpush3.msra.mxu0 %v679_v62  ;;  %v661_v1 = vld [vmem:[%s1957_s2 + $0xa8] sm:$0xff] }
 0x14c   :  { %1222 = vmatprep.subr.mxu0 %v678_v2  ;;  %v645_v5 = vld [vmem:[%s1957_s2 + $0x28] sm:$0xff] }
 0x14d   :  { %v203_v11 = vrot.slane %v202_v8, 1  ;;  %v215_v12 = vadd.f32 %v214_v9, %v213_v6  ;;  %1223 = vmatpush3.msra.mxu0 %v678_v2  ;;  %v660_v6 = vld [vmem:[%s1957_s2 + $0xa0] sm:$0xff] }
 0x14e   :  { %v644_v9 = vld [vmem:[%s1957_s2 + $0x20] sm:$0xff] }
 0x14f   :  { %v216_v14 = vrot.slane %v215_v12, 1  ;;  %v204_v15 = vadd.f32 %v203_v11, %v202_v8  ;;  %v677_v8 = vld [vmem:[%s1957_s2 + $0x128] sm:$0xff]  ;;  %v659_v11 = vld [vmem:[%s1957_s2 + $0x98] sm:$0xff] }
 0x150   :  { %1224 = vmatprep.subr.mxu0 %v677_v8 }
 0x151   :  { %v217_v17 = vadd.f32 %v216_v14, %v215_v12  ;;  %1225 = vmatpush3.msra.mxu0 %v677_v8  ;;  %v676_v12 = vld [vmem:[%s1957_s2 + $0x120] sm:$0xff]  ;;  %v643_v14 = vld [vmem:[%s1957_s2 + $0x18] sm:$0xff] }
 0x152   :  { %1226 = vmatprep.subr.mxu0 %v676_v12 }
 0x153   :  { %v218_v18 = vsel %vm2003_vm1, %v204_v15, %v217_v17  ;;  %v658_v15 = vld [vmem:[%s1957_s2 + $0x90] sm:$0xff]  ;;  %v675_v17 = vld [vmem:[%s1957_s2 + $0x118] sm:$0xff]  ;;  %1227 = vmatpush3.msra.mxu0 %v676_v12  ;;  %vm2008_vm1 = vmmov %vm2006_vm0 }
 0x154   :  { %1202 = vmatmul.mubr.f32.vlgmr.msra.gmra.mxu1 %v218_v18  ;;  %v642_v18 = vld [vmem:[%s1957_s2 + $0x10] sm:$0xff]  ;;  %1228 = vmatprep.subr.mxu0 %v675_v17 }
 0x155   :  { %1089 = vmatpush3.msra.mxu1 %v655_v21  ;;  %v674_v21 = vld [vmem:[%s1957_s2 + $0x110] sm:$0xff]  ;;  %1229 = vmatpush3.msra.mxu0 %v675_v17 }
 0x156   :  { %1090 = vmatprep.subr.mxu1 %v670_v24  ;;  %v641_v24 = vld [vmem:[%s1957_s2 + $0x8] sm:$0xff]  ;;  %1230 = vmatprep.subr.mxu0 %v674_v21 }
 0x157   :  { %1091 = vmatpush3.msra.mxu1 %v654_v28  ;;  %1231 = vmatpush3.msra.mxu0 %v674_v21  ;;  %v673_v28 = vld [vmem:[%s1957_s2 + $0x108] sm:$0xff] }
 0x158   :  { %1092 = vmatprep.subr.mxu1 %v669_v29  ;;  %1232 = vmatprep.subr.mxu0 %v673_v28  ;;  %v640_v29 = vld [vmem:[%s1957_s2] sm:$0xff] }
 0x159   :  { %1093 = vmatpush3.msra.mxu1 %v653_v34  ;;  %1233 = vmatpush3.msra.mxu0 %v673_v28 }
 0x15a   :  { %1094 = vmatprep.subr.mxu1 %v668_v36  ;;  %1234 = vmatprep.subr.mxu0 %v672_v33 }
 0x15b   :  { %1095 = vmatpush3.msra.mxu1 %v652_v38  ;;  %1235 = vmatpush3.msra.mxu0 %v672_v33 }
 0x15c   :  { %1096 = vmatprep.subr.mxu1 %v667_v40 }
 0x15d   :  { %1097 = vmatpush3.msra.mxu1 %v651_v42 }
 0x15e   :  { %1098 = vmatprep.subr.mxu1 %v666_v47  ;;  %v1290_v47 = vmov 1966171168  }
 0x15f   :  { %1099 = vmatpush3.msra.mxu1 %v650_v26  ;;  %v570_v49 = vunpack.c.l.s4 %v1290_v47 }
 0x160   :  { %1100 = vmatprep.subr.mxu1 %v665_v51 }
 0x161   :  { %1101 = vmatpush3.msra.mxu1 %v649_v53  ;;  %v571_v26 = vunpack.c.0.s8 %v570_v49 }
 0x162   :  { %1102 = vmatprep.subr.mxu1 %v664_v54 }
 0x163   :  { %1103 = vmatpush3.msra.mxu1 %v648_v56  ;;  %v1833_v51 = vsub.s32 %v571_v26, %v1398_v22 }
 0x164   :  { %1104 = vmatprep.subr.mxu1 %v663_v58  ;;  %v1841_v58 = vsub.s32 0, %v1398_v22 }
 0x165   :  { %1105 = vmatpush3.msra.mxu1 %v647_v60  ;;  %v195_v60 = vld [vmem:[%s1959_s4] sm:$0x1] }
 0x166   :  { %1106 = vmatprep.subr.mxu1 %v662_v61 }
 0x167   :  { %1107 = vmatpush3.msra.mxu1 %v646_v63 }
 0x168   :  { %1108 = vmatprep.subr.mxu1 %v661_v1 }
 0x169   :  { %1109 = vmatpush3.msra.mxu1 %v645_v5 }
 0x16a   :  { %1110 = vmatprep.subr.mxu1 %v660_v6 }
 0x16b   :  { %1111 = vmatpush3.msra.mxu1 %v644_v9 }
 0x16c   :  { %1112 = vmatprep.subr.mxu1 %v659_v11 }
 0x16d   :  { %1113 = vmatpush3.msra.mxu1 %v643_v14 }
 0x16e   :  { %1114 = vmatprep.subr.mxu1 %v658_v15 }
 0x16f   :  { %1115 = vmatpush3.msra.mxu1 %v642_v18 }
 0x170   :  { %1116 = vmatprep.subr.mxu1 %v657_v20 }
 0x171   :  { %1117 = vmatpush3.msra.mxu1 %v641_v24 }
 0x172   :  { %1118 = vmatprep.subr.mxu1 %v656_v25 }
 0x173   :  { %1119 = vmatpush3.msra.mxu1 %v640_v29 }
 0x174   :  { %1242 = vmatprep.subr.mxu1 %v1286_v3 }
 0x214   :  { %v556_v34 = vpop.f32.mrf.mxu1 }
 0x215   :  { %v560_v36 = vmul.f32 0.001953125, %v556_v34 }
 0x216   :  { %v1203_v37 = vpop.f32.mrf.mxu1 }
 0x217   :  { %v561_v38 = vmul.f32 %v560_v36, %v560_v36 }
 0x219   :  { %v563_v40 = vrot.slane %v561_v38, 7 }
 0x21b   :  { %v565_v41 = vsub.f32 %v560_v36, %v563_v40 }
 0x21d   :  { %v566_v42 = vadd.f32 1e-05, %v565_v41 }
 0x21f   :  { %1282 = vrsqrt.f32 %v566_v42 }
 0x22c   :  { %v1283_v52 = vpop.eup %1282 }
 0x22d   :  { %v575_v53 = vrot.slane %v1283_v52, %v1833_v51 }
 0x22f   :  { %v576_v54 = vcombine.high %v575_v53, %v575_v53 }
 0x231   :  { %v583_v56 = vrot.slane %v576_v54, %v1833_v51 }
 0x233   :  { %v585_v59 = vmul.f32 %v583_v56, %v194_v55 }
 0x235   :  { %v586_v61 = vmul.f32 %v585_v59, %v560_v36  ;;  %v592_v62 = vrot.slane %v585_v59, %v1841_v58 }
 0x237   :  { %v587_v63 = vsub.f32 %v195_v60, %v586_v61  ;;  %v594_v1 = vmul.f32 %v592_v62, %v1666_v46  ;;  %v595_v5 = vmul.f32 %v592_v62, %v1668_v48  ;;  %v596_v6 = vmul.f32 %v592_v62, %v1672_v50 }
 0x238   :  { %v597_v22 = vmul.f32 %v592_v62, %v1681_v57 }
 0x239   :  { %v602_v2 = vrot.slane %v587_v63, %v1841_v58 }
 0x23b   :  { %v604_v8 = vadd.f32 %v602_v2, %v594_v1  ;;  %v605_v9 = vadd.f32 %v602_v2, %v595_v5  ;;  %v606_v11 = vadd.f32 %v602_v2, %v596_v6  ;;  %v607_v12 = vadd.f32 %v602_v2, %v597_v22 }
 0x23d   :  { %v608_v14 = vmax.f32 %v604_v8, 0.0  ;;  %v609_v15 = vmax.f32 %v605_v9, 0.0  ;;  %v610_v17 = vmax.f32 %v606_v11, 0.0  ;;  %v611_v18 = vmax.f32 %v607_v12, 0.0 }
 0x23f   :  { %v616_v46 = vrot.slane %v608_v14, 7  ;;  %752 = vmatprep.mubr.f32.mxu1 %v608_v14  ;;  %v628_v48 = vrot.slane %v608_v14, 1  ;;  %v629_v21 = vrot.slane %v609_v15, 1  ;;  %v631_v50 = vrot.slane %v610_v17, 1 }
 0x240   :  { %v632_v24 = vrot.slane %v611_v18, 1  ;;  %v617_v57 = vrot.slane %v609_v15, 7  ;;  %v619_v33 = vrot.slane %v610_v17, 7  ;;  %v620_v34 = vrot.slane %v611_v18, 7 }
 0x241   :  { %1050 = vmatmul.mubr.msk.f32.vlgmr.msra.gmra.mxu1 %vm1853_vm2, %v616_v46  ;;  %v630_v25 = vsel %vm2006_vm0, %v628_v48, %v629_v21 }
 0x242   :  { %757 = vmatprep.mubr.f32.mxu1 %v609_v15  ;;  %1236 = vmatprep.mubr.f32.mxu0 %v630_v25  ;;  %v633_v28 = vsel %vm2008_vm1, %v631_v50, %v632_v24  ;;  %v618_v29 = vsel %vm2009_vm14, %v616_v46, %v617_v57  ;;  %v858_v50 = vld [vmem:[%s1960_s5] sm:$0x1] }
 0x243   :  { %1237 = vmatmul.mubr.msk.f32.vlgmr.msra.gmra.mxu0 %vm2007_vm15, %v629_v21  ;;  %1243 = vmatpush3.msk.msra.mxu1 %vm1416_vm3, %v1288_v32  ;;  %vm2010_vm3 = vmmov %vm2009_vm14  ;;  %v859_v25 = vld [vmem:[%s1961_s6] sm:$0x1] }
 0x244   :  { %1239 = vmatprep.mubr.f32.mxu0 %v633_v28  ;;  %1244 = vmatprep.subr.mxu1 %v1286_v3  ;;  %v621_v30 = vsel %vm2010_vm3, %v619_v33, %v620_v34 }
 0x245   :  { %758 = vmatmul.mubr.f32.gmra.mxu1 %v618_v29 }
 0x246   :  { %762 = vmatprep.mubr.f32.mxu1 %v610_v17  ;;  %1245 = vmatpush3.msk.msra.mxu1 %vm1518_vm4, %v1288_v32  ;;  %vm2012_vm4 = vnez %v1994_v35 }
 0x247   :  { %1240 = vmatmul.mubr.msk.f32.gmra.mxu0 %vm2006_vm0, %v632_v24  ;;  %1246 = vmatprep.subr.mxu1 %v1286_v3 }
 0x248   :  { %1247 = vmatpush3.msk.msra.mxu1 %vm1528_vm5, %v1288_v32  ;;  %vm2013_vm5 = vnez %v1996_v39 }
 0x249   :  { %1052 = vmatmul.mubr.msk.f32.gmra.mxu1 %vm1853_vm2, %v619_v33  ;;  %1248 = vmatprep.subr.mxu1 %v1286_v3  ;;  %vm2011_vm2 = vmmov 0  }
 0x24a   :  { %767 = vmatprep.mubr.f32.mxu1 %v611_v18  ;;  %1249 = vmatpush3.msk.msra.mxu1 %vm1538_vm6, %v1288_v32  ;;  %vm2014_vm6 = vnez %v1998_v43 }
 0x24b   :  { %1250 = vmatprep.subr.mxu1 %v1286_v3 }
 0x24c   :  { %1251 = vmatpush3.msk.msra.mxu1 %vm1548_vm7, %v1288_v32  ;;  %vm2015_vm7 = vnez %v2000_v44 }
 0x24d   :  { %768 = vmatmul.mubr.f32.gmra.mxu1 %v621_v30  ;;  %1252 = vmatprep.subr.mxu1 %v1286_v3 }
 0x24e   :  { %1253 = vmatpush3.msk.msra.mxu1 %vm1558_vm8, %v1288_v32  ;;  %1274 = vmatprep.mubr.msk.f32.mxu1 %vm2011_vm2, %v1286_v3  ;;  %vm2016_vm8 = vnez %v2002_v45 }
 0x24f   :  { %1254 = vmatprep.subr.mxu1 %v1286_v3 }
 0x250   :  { %1255 = vmatpush3.msk.msra.mxu1 %vm1568_vm9, %v1288_v32  ;;  %vm2017_vm9 = vmmov %vm2010_vm3 }
 0x251   :  { %1256 = vmatprep.subr.mxu1 %v1286_v3 }
 0x252   :  { %1257 = vmatpush3.msk.msra.mxu1 %vm1578_vm10, %v1288_v32 }
 0x253   :  { %1258 = vmatprep.subr.mxu1 %v1286_v3 }
 0x254   :  { %1259 = vmatpush3.msk.msra.mxu1 %vm1588_vm11, %v1288_v32 }
 0x255   :  { %1260 = vmatprep.subr.mxu1 %v1286_v3 }
 0x256   :  { %1261 = vmatpush3.msk.msra.mxu1 %vm1598_vm12, %v1288_v32 }
 0x257   :  { %1262 = vmatprep.subr.mxu1 %v1286_v3 }
 0x258   :  { %1263 = vmatpush3.msk.msra.mxu1 %vm1608_vm13, %v1288_v32 }
 0x259   :  { %1264 = vmatprep.subr.mxu1 %v1286_v3 }
 0x25a   :  { %1265 = vmatpush3.msk.msra.mxu1 %vm2012_vm4, %v1288_v32 }
 0x25b   :  { %1266 = vmatprep.subr.mxu1 %v1286_v3 }
 0x25c   :  { %1267 = vmatpush3.msk.msra.mxu1 %vm2013_vm5, %v1288_v32 }
 0x25d   :  { %1268 = vmatprep.subr.mxu1 %v1286_v3 }
 0x25e   :  { %1269 = vmatpush3.msk.msra.mxu1 %vm2014_vm6, %v1288_v32 }
 0x25f   :  { %1270 = vmatprep.subr.mxu1 %v1286_v3 }
 0x260   :  { %1271 = vmatpush3.msk.msra.mxu1 %vm2015_vm7, %v1288_v32 }
 0x261   :  { %1272 = vmatprep.subr.mxu1 %v1286_v3 }
 0x262   :  { %1273 = vmatpush3.msk.msra.mxu1 %vm2016_vm8, %v1288_v32 }
 0x301   :  { %v1120_v0 = vpop.f32.mrf.mxu1 }
 0x303   :  { %v1121_v4 = vpop.f32.mrf.mxu1  ;;  %v1238_v7 = vpop.f32.mrf.mxu0 }
 0x304   :  { %v1122_v19 = vadd.f32 %v1121_v4, %v1120_v0 }
 0x305   :  { %v1123_v10 = vpop.f32.mrf.mxu1  ;;  %v839_v13 = vpop.f32.mrf.mxu0 }
 0x306   :  { %v840_v43 = vadd.f32 %v1122_v19, %v839_v13 }
 0x307   :  { %v1124_v16 = vpop.f32.mrf.mxu1  ;;  %v1241_v27 = vpop.f32.mrf.mxu0 }
 0x308   :  { %v1125_v23 = vadd.f32 %v1124_v16, %v1123_v10  ;;  %v869_v32 = vmul.f32 %v840_v43, %v840_v43 }
 0x309   :  { %v1126_v31 = vpop.f32.mrf.mxu1  ;;  %v849_v36 = vpop.f32.mrf.mxu0 }
 0x30a   :  { %v845_v35 = vadd.f32 %v1238_v7, %v1125_v23 }
 0x30b   :  { %v1127_v39 = vpop.f32.mrf.mxu1 }
 0x30c   :  { %v1128_v44 = vadd.f32 %v1127_v39, %v1126_v31  ;;  %v870_v37 = vmul.f32 %v845_v35, %v845_v35  ;;  %v860_v40 = vadd.f32 %v845_v35, %v840_v43 }
 0x30d   :  { %v1129_v3 = vpop.f32.mrf.mxu1 }
 0x30e   :  { %v850_v38 = vadd.f32 %v1128_v44, %v849_v36  ;;  %v873_v47 = vadd.f32 %v870_v37, %v869_v32 }
 0x30f   :  { %v1130_v45 = vpop.f32.mrf.mxu1 }
 0x310   :  { %v871_v41 = vmul.f32 %v850_v38, %v850_v38  ;;  %v1131_v42 = vadd.f32 %v1130_v45, %v1129_v3  ;;  %v861_v49 = vadd.f32 %v860_v40, %v850_v38 }
 0x312   :  { %v855_v26 = vadd.f32 %v1241_v27, %v1131_v42  ;;  %v874_v52 = vadd.f32 %v873_v47, %v871_v41 }
 0x314   :  { %v862_v53 = vadd.f32 %v861_v49, %v855_v26  ;;  %v872_v54 = vmul.f32 %v855_v26, %v855_v26 }
 0x316   :  { %v863_v55 = vrot.slane %v862_v53, 4  ;;  %v875_v56 = vadd.f32 %v874_v52, %v872_v54 }
 0x318   :  { %v864_v59 = vadd.f32 %v863_v55, %v862_v53  ;;  %v876_v60 = vrot.slane %v875_v56, 4 }
 0x31a   :  { %v865_v61 = vrot.slane %v864_v59, 2  ;;  %v877_v62 = vadd.f32 %v876_v60, %v875_v56 }
 0x31c   :  { %v866_v63 = vadd.f32 %v865_v61, %v864_v59  ;;  %v878_v1 = vrot.slane %v877_v62, 2 }
 0x31e   :  { %v867_v2 = vrot.slane %v866_v63, 1  ;;  %v879_v5 = vadd.f32 %v878_v1, %v877_v62 }
 0x320   :  { %v880_v6 = vrot.slane %v879_v5, 1  ;;  %v868_v22 = vadd.f32 %v867_v2, %v866_v63 }
 0x322   :  { %v881_v8 = vadd.f32 %v880_v6, %v879_v5 }
 0x324   :  { %v882_v9 = vsel %vm2017_vm9, %v868_v22, %v881_v8 }
 0x325   :  { %1275 = vmatmul.mubr.f32.vlgmr.msra.gmra.mxu1 %v882_v9 }
 0x3e5   :  { %v949_v11 = vpop.f32.mrf.mxu1 }
 0x3e6   :  { %v953_v12 = vmul.f32 0.001953125, %v949_v11 }
 0x3e7   :  { %v1276_v14 = vpop.f32.mrf.mxu1 }
 0x3e8   :  { %v954_v15 = vmul.f32 %v953_v12, %v953_v12 }
 0x3ea   :  { %v956_v17 = vrot.slane %v954_v15, 7 }
 0x3ec   :  { %v958_v18 = vsub.f32 %v953_v12, %v956_v17 }
 0x3ee   :  { %v959_v20 = vadd.f32 1e-05, %v958_v18 }
 0x3f0   :  { %1284 = vrsqrt.f32 %v959_v20 }
 0x3fd   :  { %v1285_v46 = vpop.eup %1284 }
 0x3fe   :  { %v968_v48 = vrot.slane %v1285_v46, %v1833_v51 }
 0x400   :  { %v969_v21 = vcombine.high %v968_v48, %v968_v48 }
 0x402   :  { %v976_v24 = vrot.slane %v969_v21, %v1833_v51 }
 0x404   :  { %v978_v57 = vmul.f32 %v976_v24, %v858_v50 }
 0x406   :  { %v979_v28 = vmul.f32 %v978_v57, %v953_v12  ;;  %v985_v29 = vrot.slane %v978_v57, %v1841_v58 }
 0x408   :  { %v980_v33 = vsub.f32 %v859_v25, %v979_v28  ;;  %v987_v34 = vmul.f32 %v985_v29, %v840_v43  ;;  %v988_v30 = vmul.f32 %v985_v29, %v845_v35  ;;  %v989_v0 = vmul.f32 %v985_v29, %v850_v38 }
 0x409   :  { %v990_v4 = vmul.f32 %v985_v29, %v855_v26 }
 0x40a   :  { %v995_v7 = vrot.slane %v980_v33, %v1841_v58 }
 0x40c   :  { %v997_v10 = vadd.f32 %v995_v7, %v987_v34  ;;  %v998_v13 = vadd.f32 %v995_v7, %v988_v30  ;;  %v999_v16 = vadd.f32 %v995_v7, %v989_v0  ;;  %v1000_v19 = vadd.f32 %v995_v7, %v990_v4 }
 0x40e   :  { %v1001_v51 = vmax.f32 %v997_v10, 0.0  ;;  %v1002_v23 = vmax.f32 %v998_v13, 0.0  ;;  %v1003_v27 = vmax.f32 %v999_v16, 0.0  ;;  %v1004_v31 = vmax.f32 %v1000_v19, 0.0 }
 0x410   :  { %1005 = vst [vmem:[%s1962_s7] sm:$0xff] %v1001_v51  ;;  %1006 = vst [vmem:[%s1962_s7 + $0x8] sm:$0xff] %v1002_v23 }
 0x411   :  { %1007 = vst [vmem:[%s1962_s7 + $0x10] sm:$0xff] %v1003_v27  ;;  %1008 = vst [vmem:[%s1962_s7 + $0x18] sm:$0xff] %v1004_v31 }

</bundles_post_ra>
